<compile_context>
chip_gen: v7x
topology: tpu7x:2x2x1
jax: 0.10.0
libtpu: 0.0.40
codegen_flags: <defaults>
</compile_context>

<pallas_src>
import numpy as np
import jax
import jax.numpy as jnp
from jax.experimental import pallas as pl
from jax.experimental.pallas import tpu as pltpu


def _round_up(a, b):
    return ((a + b - 1) // b) * b


# ------------------------------------------------------------------ parameters
def morlet_wavelet_filter(center_freq, bandwidth, size):
    t = np.linspace(-size // 2, size // 2, size)
    wavelet = np.exp(1j * 2 * np.pi * center_freq * t) * np.exp(-t ** 2 / (2 * bandwidth ** 2))
    return np.real(wavelet), np.imag(wavelet)


def create_W(P, filter_list, rng):
    """Exact replication of LearnableWaveletTransform.create_W (torch loop)."""
    filter_list = np.asarray(filter_list, dtype=np.float32)
    max_epsilon = np.min(np.abs(filter_list))
    w = rng.standard_normal((1, 1, P)).astype(np.float32) * 0.1 * max_epsilon
    L = len(filter_list)
    for i in range(P):
        filter_index = 0
        for j in range(i - L // 2, P):
            if j < 0:
                filter_index += 1
            elif filter_index < L:
                w[0, 0, j] = filter_list[filter_index]
                filter_index += 1
    return w  # (1, 1, P)


# ------------------------------------------------------------------ kernel
def wavelet_conv_kernel(wh_ref, wl_ref, x_ref, l_ref, h_ref):
    """One row-tile of the dual 1-D convolution.

    wh_ref, wl_ref : (K,)   f32 in SMEM   (h_fn / l_fn conv weights)
    x_ref          : (ROW, W + HALO) f32 in VMEM  (zero-padded input rows)
    l_ref, h_ref   : (ROW, W)        f32 in VMEM  (lane-dense outputs)
    """
    K = wh_ref.shape[0]
    W = l_ref.shape[-1]                 # multiple of 128
    halo = x_ref.shape[-1] - W          # multiple of 128, >= K-1
    chunk = min(W, 512)                 # time chunk (multiple of 128): bounds vreg pressure

    start = 0
    while start < W:                    # static python loop -> fully unrolled
        cw = min(chunk, W - start)
        wlen = cw + halo
        xs = x_ref[:, start:start + wlen]        # lane-aligned slice (no copy)
        acc_h = xs * wh_ref[0]
        acc_l = xs * wl_ref[0]
        for k in range(1, K):                    # K is small & static -> unrolled
            # k-shifted operand via XLU rotate (shift = wlen-k == -k mod wlen).
            # Wrap-around only pollutes columns >= cw, which are never stored.
            xk = pltpu.roll(xs, shift=wlen - k, axis=1)
            acc_h = acc_h + xk * wh_ref[k]
            acc_l = acc_l + xk * wl_ref[k]
        # Unmasked, lane-aligned stores (cw and start are multiples of 128).
        l_ref[:, start:start + cw] = acc_l[:, :cw].astype(l_ref.dtype)
        h_ref[:, start:start + cw] = acc_h[:, :cw].astype(h_ref.dtype)
        start += cw


# ------------------------------------------------------------------ wrapper
def learnable_wavelet_transform(x, w_h, w_l):
    """Forward pass: returns (l_outs, h_outs), each (B, C, T_out)."""
    B, C, T = x.shape
    K = int(w_h.shape[0])
    pad = K // 2
    T_out = T + 2 * pad - K + 1            # torch Conv1d output length
    T_pad = T + 2 * pad                    # = T_out + K - 1

    W = _round_up(T_out, 128)              # lane-dense output width
    HALO = _round_up(max(K - 1, 1), 128)   # right halo for the in-kernel shifts
    W_in = W + HALO                        # input block width (>= T_pad)

    N = B * C
    n8 = _round_up(N, 8)

    # Row tile: biggest that fits a conservative double-buffered VMEM budget
    # (input + 2 outputs, f32).  Budget stays inside v7x's 64 MiB physical
    # VMEM; vmem_limit_bytes below is raised above the scoped defaults so
    # v5e/v6e can actually use the larger blocks.
    bytes_per_row = 4 * (W_in + 2 * W)
    tile_budget = 32 * 1024 * 1024
    row_budget = max(8, tile_budget // (2 * bytes_per_row))
    ROW = max(8, min(512, (row_budget // 8) * 8))
    if ROW >= n8:
        # Keep >= 2 grid blocks when there is enough work (megacore on v7x).
        ROW = n8 if n8 <= 8 else max(8, _round_up((n8 + 1) // 2, 8))
    N_pad = _round_up(n8, ROW)
    grid = (N_pad // ROW,)

    # Single fused pad: row padding + Conv1d zero pad (left) + alignment/halo (right).
    xf = x.reshape(N, T).astype(jnp.float32)
    xp = jnp.pad(xf, ((0, N_pad - N), (pad, W_in - pad - T)))

    l_out, h_out = pl.pallas_call(
        wavelet_conv_kernel,
        out_shape=(
            jax.ShapeDtypeStruct((N_pad, W), jnp.float32),
            jax.ShapeDtypeStruct((N_pad, W), jnp.float32),
        ),
        grid=grid,
        in_specs=[
            pl.BlockSpec(memory_space=pltpu.MemorySpace.SMEM),   # w_h (K,)
            pl.BlockSpec(memory_space=pltpu.MemorySpace.SMEM),   # w_l (K,)
            pl.BlockSpec((ROW, W_in), lambda i: (i, 0)),         # padded input rows
        ],
        out_specs=(
            pl.BlockSpec((ROW, W), lambda i: (i, 0)),
            pl.BlockSpec((ROW, W), lambda i: (i, 0)),
        ),
        compiler_params=pltpu.CompilerParams(
            dimension_semantics=("parallel",),
            vmem_limit_bytes=48 * 1024 * 1024,
        ),
    )(w_h, w_l, xp)

    l_out = l_out[:N, :T_out].reshape(B, C, T_out)
    h_out = h_out[:N, :T_out].reshape(B, C, T_out)
    return l_out, h_out


# ------------------------------------------------------------------ main
if __name__ == "__main__":
    # Small shapes consistent with the module: x is (B, C, T=seq_len)
    B, C, T = 2, 4, 16
    seq_len = T
    num_scales = 8          # kernel size of the Conv1d (small, keeps demo tiny)

    # --- deterministic parameter initialization (mirrors __init__) ---
    wav_real, wav_imag = morlet_wavelet_filter(1.0, 1.5, seq_len)
    h_filter = wav_real[:num_scales].astype(np.float32)
    l_filter = wav_imag[:num_scales].astype(np.float32)
    rng = np.random.default_rng(0)
    w_h_np = create_W(num_scales, h_filter, rng)[0, 0]   # h_fn.weight -> (K,)
    w_l_np = create_W(num_scales, l_filter, rng)[0, 0]   # l_fn.weight -> (K,)
    # TODO(synk): center_freq / bandwidth are learnable params but unused in forward(); omitted.

    w_h = jnp.asarray(w_h_np, dtype=jnp.float32)
    w_l = jnp.asarray(w_l_np, dtype=jnp.float32)

    # --- deterministic input ---
    key = jax.random.PRNGKey(0)
    x = jax.random.normal(key, (B, C, T), dtype=jnp.float32)

    # --- run kernel ---
    l_out, h_out = learnable_wavelet_transform(x, w_h, w_l)
    jax.block_until_ready((l_out, h_out))

    # --- numpy reference (cross-correlation with zero padding, per channel) ---
    pad = num_scales // 2
    T_out = T + 2 * pad - num_scales + 1
    x_np = np.asarray(x).reshape(B * C, T)
    xp_np = np.pad(x_np, ((0, 0), (pad, pad)))
    ref_h = np.zeros((B * C, T_out), np.float32)
    ref_l = np.zeros((B * C, T_out), np.float32)
    for k in range(num_scales):
        ref_h += xp_np[:, k:k + T_out] * w_h_np[k]
        ref_l += xp_np[:, k:k + T_out] * w_l_np[k]
    ref_h = ref_h.reshape(B, C, T_out)
    ref_l = ref_l.reshape(B, C, T_out)

    assert l_out.shape == (B, C, T_out) and h_out.shape == (B, C, T_out)
    assert np.allclose(np.asarray(l_out), ref_l, atol=1e-4, rtol=1e-4)
    assert np.allclose(np.asarray(h_out), ref_h, atol=1e-4, rtol=1e-4)

    print("KERNEL_OK")
</pallas_src>

<mosaic_0001>
module attributes {stable_mosaic.version = 11 : i64} {
  func.func @wavelet_conv_kernel(%arg0: i32, %arg1: memref<8xf32, #tpu.memory_space<smem>>, %arg2: memref<8xf32, #tpu.memory_space<smem>>, %arg3: memref<8x256xf32, #tpu.memory_space<vmem>>, %arg4: memref<8x128xf32, #tpu.memory_space<vmem>>, %arg5: memref<8x128xf32, #tpu.memory_space<vmem>>) attributes {dimension_semantics = [#tpu.dimension_semantics<parallel>], iteration_bounds = array<i64: 1>, scalar_prefetch = 0 : i64, scratch_operands = 0 : i64, tpu.core_type = #tpu.core_type<tc>, window_params = [{transform_indices = @transform_0, window_bounds = array<i64: 8>}, {transform_indices = @transform_1, window_bounds = array<i64: 8>}, {transform_indices = @transform_2, window_bounds = array<i64: 8, 256>}, {transform_indices = @transform_3, window_bounds = array<i64: 8, 128>}, {transform_indices = @transform_4, window_bounds = array<i64: 8, 128>}]} {
    %c0 = arith.constant 0 : index
    %c0_0 = arith.constant 0 : index
    %0 = vector.load %arg3[%c0, %c0_0] : memref<8x256xf32, #tpu.memory_space<vmem>>, vector<8x256xf32>
    %c0_1 = arith.constant 0 : index
    %1 = memref.load %arg1[%c0_1] : memref<8xf32, #tpu.memory_space<smem>>
    %2 = vector.broadcast %1 : f32 to vector<8x256xf32>
    %3 = arith.mulf %0, %2 : vector<8x256xf32>
    %c0_2 = arith.constant 0 : index
    %4 = memref.load %arg2[%c0_2] : memref<8xf32, #tpu.memory_space<smem>>
    %5 = vector.broadcast %4 : f32 to vector<8x256xf32>
    %6 = arith.mulf %0, %5 : vector<8x256xf32>
    %c255_i32 = arith.constant 255 : i32
    %7 = tpu.dynamic_rotate %0 by %c255_i32 dim 1 : vector<8x256xf32>, i32 -> vector<8x256xf32>
    %c1 = arith.constant 1 : index
    %8 = memref.load %arg1[%c1] : memref<8xf32, #tpu.memory_space<smem>>
    %9 = vector.broadcast %8 : f32 to vector<8x256xf32>
    %10 = arith.mulf %7, %9 : vector<8x256xf32>
    %11 = arith.addf %3, %10 : vector<8x256xf32>
    %c1_3 = arith.constant 1 : index
    %12 = memref.load %arg2[%c1_3] : memref<8xf32, #tpu.memory_space<smem>>
    %13 = vector.broadcast %12 : f32 to vector<8x256xf32>
    %14 = arith.mulf %7, %13 : vector<8x256xf32>
    %15 = arith.addf %6, %14 : vector<8x256xf32>
    %c254_i32 = arith.constant 254 : i32
    %16 = tpu.dynamic_rotate %0 by %c254_i32 dim 1 : vector<8x256xf32>, i32 -> vector<8x256xf32>
    %c2 = arith.constant 2 : index
    %17 = memref.load %arg1[%c2] : memref<8xf32, #tpu.memory_space<smem>>
    %18 = vector.broadcast %17 : f32 to vector<8x256xf32>
    %19 = arith.mulf %16, %18 : vector<8x256xf32>
    %20 = arith.addf %11, %19 : vector<8x256xf32>
    %c2_4 = arith.constant 2 : index
    %21 = memref.load %arg2[%c2_4] : memref<8xf32, #tpu.memory_space<smem>>
    %22 = vector.broadcast %21 : f32 to vector<8x256xf32>
    %23 = arith.mulf %16, %22 : vector<8x256xf32>
    %24 = arith.addf %15, %23 : vector<8x256xf32>
    %c253_i32 = arith.constant 253 : i32
    %25 = tpu.dynamic_rotate %0 by %c253_i32 dim 1 : vector<8x256xf32>, i32 -> vector<8x256xf32>
    %c3 = arith.constant 3 : index
    %26 = memref.load %arg1[%c3] : memref<8xf32, #tpu.memory_space<smem>>
    %27 = vector.broadcast %26 : f32 to vector<8x256xf32>
    %28 = arith.mulf %25, %27 : vector<8x256xf32>
    %29 = arith.addf %20, %28 : vector<8x256xf32>
    %c3_5 = arith.constant 3 : index
    %30 = memref.load %arg2[%c3_5] : memref<8xf32, #tpu.memory_space<smem>>
    %31 = vector.broadcast %30 : f32 to vector<8x256xf32>
    %32 = arith.mulf %25, %31 : vector<8x256xf32>
    %33 = arith.addf %24, %32 : vector<8x256xf32>
    %c252_i32 = arith.constant 252 : i32
    %34 = tpu.dynamic_rotate %0 by %c252_i32 dim 1 : vector<8x256xf32>, i32 -> vector<8x256xf32>
    %c4 = arith.constant 4 : index
    %35 = memref.load %arg1[%c4] : memref<8xf32, #tpu.memory_space<smem>>
    %36 = vector.broadcast %35 : f32 to vector<8x256xf32>
    %37 = arith.mulf %34, %36 : vector<8x256xf32>
    %38 = arith.addf %29, %37 : vector<8x256xf32>
    %c4_6 = arith.constant 4 : index
    %39 = memref.load %arg2[%c4_6] : memref<8xf32, #tpu.memory_space<smem>>
    %40 = vector.broadcast %39 : f32 to vector<8x256xf32>
    %41 = arith.mulf %34, %40 : vector<8x256xf32>
    %42 = arith.addf %33, %41 : vector<8x256xf32>
    %c251_i32 = arith.constant 251 : i32
    %43 = tpu.dynamic_rotate %0 by %c251_i32 dim 1 : vector<8x256xf32>, i32 -> vector<8x256xf32>
    %c5 = arith.constant 5 : index
    %44 = memref.load %arg1[%c5] : memref<8xf32, #tpu.memory_space<smem>>
    %45 = vector.broadcast %44 : f32 to vector<8x256xf32>
    %46 = arith.mulf %43, %45 : vector<8x256xf32>
    %47 = arith.addf %38, %46 : vector<8x256xf32>
    %c5_7 = arith.constant 5 : index
    %48 = memref.load %arg2[%c5_7] : memref<8xf32, #tpu.memory_space<smem>>
    %49 = vector.broadcast %48 : f32 to vector<8x256xf32>
    %50 = arith.mulf %43, %49 : vector<8x256xf32>
    %51 = arith.addf %42, %50 : vector<8x256xf32>
    %c250_i32 = arith.constant 250 : i32
    %52 = tpu.dynamic_rotate %0 by %c250_i32 dim 1 : vector<8x256xf32>, i32 -> vector<8x256xf32>
    %c6 = arith.constant 6 : index
    %53 = memref.load %arg1[%c6] : memref<8xf32, #tpu.memory_space<smem>>
    %54 = vector.broadcast %53 : f32 to vector<8x256xf32>
    %55 = arith.mulf %52, %54 : vector<8x256xf32>
    %56 = arith.addf %47, %55 : vector<8x256xf32>
    %c6_8 = arith.constant 6 : index
    %57 = memref.load %arg2[%c6_8] : memref<8xf32, #tpu.memory_space<smem>>
    %58 = vector.broadcast %57 : f32 to vector<8x256xf32>
    %59 = arith.mulf %52, %58 : vector<8x256xf32>
    %60 = arith.addf %51, %59 : vector<8x256xf32>
    %c249_i32 = arith.constant 249 : i32
    %61 = tpu.dynamic_rotate %0 by %c249_i32 dim 1 : vector<8x256xf32>, i32 -> vector<8x256xf32>
    %c7 = arith.constant 7 : index
    %62 = memref.load %arg1[%c7] : memref<8xf32, #tpu.memory_space<smem>>
    %63 = vector.broadcast %62 : f32 to vector<8x256xf32>
    %64 = arith.mulf %61, %63 : vector<8x256xf32>
    %65 = arith.addf %56, %64 : vector<8x256xf32>
    %c7_9 = arith.constant 7 : index
    %66 = memref.load %arg2[%c7_9] : memref<8xf32, #tpu.memory_space<smem>>
    %67 = vector.broadcast %66 : f32 to vector<8x256xf32>
    %68 = arith.mulf %61, %67 : vector<8x256xf32>
    %69 = arith.addf %60, %68 : vector<8x256xf32>
    %70 = vector.extract_strided_slice %69 {offsets = [0, 0], sizes = [8, 128], strides = [1, 1]} : vector<8x256xf32> to vector<8x128xf32>
    %c0_10 = arith.constant 0 : index
    %c0_11 = arith.constant 0 : index
    %71 = vector.load %arg4[%c0_10, %c0_11] : memref<8x128xf32, #tpu.memory_space<vmem>>, vector<8x128xf32>
    tpu.vector_store %arg4[%c0_10, %c0_11], %70 {strides = array<i32>} : memref<8x128xf32, #tpu.memory_space<vmem>>, vector<8x128xf32>,
    %72 = vector.extract_strided_slice %65 {offsets = [0, 0], sizes = [8, 128], strides = [1, 1]} : vector<8x256xf32> to vector<8x128xf32>
    %c0_12 = arith.constant 0 : index
    %c0_13 = arith.constant 0 : index
    %73 = vector.load %arg5[%c0_12, %c0_13] : memref<8x128xf32, #tpu.memory_space<vmem>>, vector<8x128xf32>
    tpu.vector_store %arg5[%c0_12, %c0_13], %72 {strides = array<i32>} : memref<8x128xf32, #tpu.memory_space<vmem>>, vector<8x128xf32>,
    return
  }
  func.func @transform_0(%arg0: i32) -> i32 {
    %c0_i32 = arith.constant 0 : i32
    %c0_i32_0 = arith.constant 0 : i32
    return %c0_i32 : i32
  }
  func.func @transform_1(%arg0: i32) -> i32 {
    %c0_i32 = arith.constant 0 : i32
    %c0_i32_0 = arith.constant 0 : i32
    return %c0_i32 : i32
  }
  func.func @transform_2(%arg0: i32) -> (i32, i32) {
    %c0_i32 = arith.constant 0 : i32
    %c0_i32_0 = arith.constant 0 : i32
    return %arg0, %c0_i32 : i32, i32
  }
  func.func @transform_3(%arg0: i32) -> (i32, i32) {
    %c0_i32 = arith.constant 0 : i32
    %c0_i32_0 = arith.constant 0 : i32
    return %arg0, %c0_i32 : i32, i32
  }
  func.func @transform_4(%arg0: i32) -> (i32, i32) {
    %c0_i32 = arith.constant 0 : i32
    %c0_i32_0 = arith.constant 0 : i32
    return %arg0, %c0_i32 : i32, i32
  }
}

</mosaic_0001>

<bundles_post_ra>
// kernel: tpu_custom_call.1
= control target key start
LH: loop header
LB: loop body
LE: loop exit
PB: predicated region body
PF: predicated region fallthrough
CT: control target
= control target key end

     0   :  { %10 = vsyncpa [#allocation5], 0  ;;  %s451_s0 = inlined_call_operand.hbm [shape: f32[8], index: 0, kind: input, shape index: {}]   ;;  %s452_s1 = inlined_call_operand.vmem [shape: f32[8], index: 1, kind: input, shape index: {}]   ;;  %s453_s2 = inlined_call_operand.hbm [shape: f32[8,256], index: 2, kind: input, shape index: {}]   ;;  %s454_s3 = inlined_call_operand.hbm [shape: f32[8,128], index: 3, kind: output, shape index: {0}]   ;;  %s455_s4 = inlined_call_operand.hbm [shape: f32[8,128], index: 4, kind: output, shape index: {1}]  }
   0x1   :  { %11 = vsyncpa [#allocation6], 0 }
   0x2   :  { %12 = vsyncpa [#allocation3], 0 }
   0x3   :  { %13 = vsyncpa [#allocation4], 0 }
   0x4   :  { %14 = vsyncpa [#allocation11], 0  ;;  %s29_s17 = sshll.u32 %s452_s1, 4  ;;  %s220_s20 = scalar_lea.hbm %s451_s0, 16  ;;  %s30_s17 = int_to_ptr.vmem [resolvable:$true] %s29_s17 }
   0x5   :  { %p221_p0 = scmp.ne.s32.totalorder %s451_s0, %s220_s20  ;;  %p224_p1 = scmp.lt.u32.totalorder %s220_s20, %s451_s0 }
   0x7   :  { %p226_p2 = pnand %p224_p1, %p221_p0 }
   0x9   :  { %229 = shalt.err (!%p226_p2)
}
   0xa   :  { %s318_s25 = smov [#allocation2]   ;;  %s230_s1 = scalar_lea.vmem %s30_s17, 16 }
   0xb   :  { %22 = dma.hbm_to_smem %s451_s0, 16, %s318_s25, [#allocation5]  }
   0xc   :  { %p231_p3 = scmp.ne.s32.totalorder %s30_s17, %s230_s1  ;;  %p235_p4 = scmp.lt.s32.totalorder %s30_s17, %s30_s17 }
   0xd   :  { %p236_p5 = scmp.lt.s32.totalorder %s230_s1, %s230_s1 }
   0xf   :  { %p237_p6 = por %p236_p5, %p235_p4 }
  0x11   :  { %p238_p7 = pnand %p237_p6, %p231_p3 }
  0x13   :  { %241 = shalt.err (!%p238_p7)
}
  0x14   :  { %s319_s28 = smov [#allocation7]   ;;  %s320_s29 = smov [#allocation8]  }
  0x15   :  { %32 = dma.vmem_to_smem %s30_s17, 16, %s319_s28, [#allocation6]  }
  0x16   :  { %s39_s30 = sshll.u32 %s320_s29, 4  ;;  %s242_s7 = scalar_lea.hbm %s453_s2, 256  ;;  %s40_s30 = int_to_ptr.vmem [resolvable:$true] %s39_s30 }
  0x17   :  { %p243_p8 = scmp.ne.s32.totalorder %s453_s2, %s242_s7  ;;  %p246_p9 = scmp.lt.u32.totalorder %s242_s7, %s453_s2 }
  0x19   :  { %p248_p10 = pnand %p246_p9, %p243_p8 }
  0x1b   :  { %251 = shalt.err (!%p248_p10)
}
  0x1c   :  { %s252_s11 = scalar_lea.vmem %s40_s30, 256  ;;  %p257_p12 = scmp.lt.s32.totalorder %s40_s30, %s40_s30 }
  0x1d   :  { %p253_p11 = scmp.ne.s32.totalorder %s40_s30, %s252_s11  ;;  %p258_p13 = scmp.lt.s32.totalorder %s252_s11, %s252_s11 }
  0x1f   :  { %p259_p0 = por %p258_p13, %p257_p12 }
  0x21   :  { %p260_p1 = pnand %p259_p0, %p253_p11 }
  0x23   :  { %263 = shalt.err (!%p260_p1)
}
  0x24   :  { %42 = dma.hbm_to_vmem [thread:$0]  %s453_s2, 256, %s40_s30, [#allocation3]  }
  0x25   :  { %308 = dma.done.wait [#allocation5], 16  }
  0x26   :  { %309 = vsyncadd [#allocation5], 4294967280 }
  0x27   :  { %310 = dma.done.wait [#allocation6], 16  }
  0x28   :  { %311 = vsyncadd [#allocation6], 4294967280 }
  0x29   :  { %312 = dma.done.wait [#allocation3], 256  }
  0x2a   :  { %313 = vsyncadd [#allocation3], 4294967040 }
  0x2b   :  { %52 = sfence }
  0x2c   :  { %v53_v0 = vld [vmem:[#allocation8] sm:$0xff]  ;;  %s321_s14 = smov 126   ;;  %s322_s15 = smov 127   ;;  %v54_v1 = vld [vmem:[#allocation8 + $0x8] sm:$0xff]  ;;  %v65_v2 = vlaneseq }
  0x2d   :  { %77 = vrot.lane.b32.xlu1 %v53_v0, %s321_s14  ;;  %61 = vrot.lane.b32.xlu0 %v53_v0, %s322_s15  ;;  %s323_s16 = smov 125   ;;  %s324_s17 = smov 124  }
  0x2e   :  { %s325_s2 = smov 123   ;;  %s326_s18 = smov 122   ;;  %v382_v3 = vand.u32 127, %v65_v2 }
  0x2f   :  { %s327_s19 = smov 121   ;;  %s55_s20 = sld [smem:[#allocation2]] }
  0x30   :  { %s58_s21 = sld [smem:[#allocation7]]  ;;  %s194_s22 = sld [smem:[#allocation2 + $0x1]]  ;;  %vm67_vm0 = vcmp.lt.s32.totalorder %v382_v3, 127  ;;  %vm81_vm1 = vcmp.lt.s32.totalorder %v382_v3, 126  ;;  %vm95_vm2 = vcmp.lt.s32.totalorder %v382_v3, 125  ;;  %vm109_vm3 = vcmp.lt.s32.totalorder %v382_v3, 124 }
  0x31   :  { %79 = vrot.lane.b32.xlu1 %v54_v1, %s321_s14  ;;  %63 = vrot.lane.b32.xlu0 %v54_v1, %s322_s15  ;;  %s195_s23 = sld [smem:[#allocation7 + $0x1]]  ;;  %s385_s24 = sld [smem:[#allocation2 + $0x2]]  ;;  %vm123_vm4 = vcmp.lt.s32.totalorder %v382_v3, 123  ;;  %vm137_vm5 = vcmp.lt.s32.totalorder %v382_v3, 122  ;;  %vm151_vm6 = vcmp.lt.s32.totalorder %v382_v3, 121 }
  0x32   :  { %s387_s25 = sld [smem:[#allocation7 + $0x2]]  ;;  %s389_s26 = sld [smem:[#allocation2 + $0x3]] }
  0x33   :  { %s391_s27 = sld [smem:[#allocation7 + $0x3]]  ;;  %s394_s1 = sld [smem:[#allocation2 + $0x4]] }
  0x34   :  { %s396_s28 = sld [smem:[#allocation7 + $0x4]]  ;;  %s398_s29 = sld [smem:[#allocation2 + $0x5]] }
  0x35   :  { %93 = vrot.lane.b32.xlu1 %v54_v1, %s323_s16  ;;  %91 = vrot.lane.b32.xlu0 %v53_v0, %s323_s16  ;;  %v56_v7 = vstv %s55_s20  ;;  %s400_s30 = sld [smem:[#allocation7 + $0x5]]  ;;  %s405_s5 = sld [smem:[#allocation2 + $0x6]] }
  0x36   :  { %v59_v9 = vstv %s58_s21  ;;  %v70_v10 = vstv %s194_s22  ;;  %v57_v13 = vmul.f32 %v56_v7, %v53_v0  ;;  %s407_s6 = sld [smem:[#allocation7 + $0x6]]  ;;  %s415_s7 = sld [smem:[#allocation2 + $0x7]] }
  0x37   :  { %v74_v11 = vstv %s195_s23  ;;  %v60_v14 = vmul.f32 %v59_v9, %v53_v0  ;;  %v84_v19 = vstv %s385_s24  ;;  %s417_s8 = sld [smem:[#allocation7 + $0x7]]  ;;  %s328_s9 = smov [#allocation9]  }
  0x38   :  { %v88_v20 = vstv %s387_s25  ;;  %v98_v26 = vstv %s389_s26  ;;  %s169_s0 = sshll.u32 %s328_s9, 4  ;;  %s329_s10 = smov [#allocation10]   ;;  %s170_s0 = int_to_ptr.vmem [resolvable:$true] %s169_s0 }
  0x39   :  { %107 = vrot.lane.b32.xlu1 %v54_v1, %s324_s17  ;;  %105 = vrot.lane.b32.xlu0 %v53_v0, %s324_s17  ;;  %v102_v27 = vstv %s391_s27  ;;  %v112_v31 = vstv %s394_s1  ;;  %s179_s11 = sshll.u32 %s329_s10, 4  ;;  %s264_s12 = scalar_lea.vmem %s170_s0, 128  ;;  %s180_s11 = int_to_ptr.vmem [resolvable:$true] %s179_s11 }
  0x3a   :  { %v116_v32 = vstv %s396_s28  ;;  %v126_v40 = vstv %s398_s29  ;;  %p265_p2 = scmp.ne.s32.totalorder %s170_s0, %s264_s12  ;;  %p269_p3 = scmp.lt.s32.totalorder %s170_s0, %s170_s0 }
  0x3b   :  { %v130_v41 = vstv %s400_s30  ;;  %v140_v45 = vstv %s405_s5  ;;  %p270_p4 = scmp.lt.s32.totalorder %s264_s12, %s264_s12 }
  0x3c   :  { %v144_v46 = vstv %s407_s6  ;;  %v154_v58 = vstv %s415_s7 }
  0x3d   :  { %121 = vrot.lane.b32.xlu1 %v54_v1, %s325_s2  ;;  %119 = vrot.lane.b32.xlu0 %v53_v0, %s325_s2  ;;  %v158_v59 = vstv %s417_s8  ;;  %p271_p5 = por %p270_p4, %p269_p3 }
  0x3f   :  { %p272_p6 = pnand %p271_p5, %p265_p2 }
  0x41   :  { %135 = vrot.lane.b32.xlu1 %v54_v1, %s326_s18  ;;  %133 = vrot.lane.b32.xlu0 %v53_v0, %s326_s18 }
  0x45   :  { %149 = vrot.lane.b32.xlu1 %v54_v1, %s327_s19  ;;  %147 = vrot.lane.b32.xlu0 %v53_v0, %s327_s19 }
  0x9f   :  { %v78_v4 = vpop.permute.xlu1 %77  ;;  %v62_v5 = vpop.permute.xlu0 %61 }
  0xa3   :  { %v80_v6 = vpop.permute.xlu1 %79  ;;  %v64_v8 = vpop.permute.xlu0 %63 }
  0xa4   :  { %v68_v12 = vsel %vm67_vm0, %v62_v5, %v64_v8  ;;  %v82_v21 = vsel %vm81_vm1, %v78_v4, %v80_v6 }
  0xa5   :  { %v71_v15 = vmul.f32 %v70_v10, %v68_v12  ;;  %v75_v16 = vmul.f32 %v74_v11, %v68_v12  ;;  %v85_v29 = vmul.f32 %v84_v19, %v82_v21  ;;  %v89_v30 = vmul.f32 %v88_v20, %v82_v21 }
  0xa7   :  { %v94_v17 = vpop.permute.xlu1 %93  ;;  %v92_v18 = vpop.permute.xlu0 %91  ;;  %v72_v22 = vadd.f32 %v71_v15, %v57_v13  ;;  %v76_v23 = vadd.f32 %v75_v16, %v60_v14 }
  0xa8   :  { %v96_v28 = vsel %vm95_vm2, %v92_v18, %v94_v17 }
  0xa9   :  { %v86_v34 = vadd.f32 %v85_v29, %v72_v22  ;;  %v90_v35 = vadd.f32 %v89_v30, %v76_v23  ;;  %v99_v36 = vmul.f32 %v98_v26, %v96_v28  ;;  %v103_v37 = vmul.f32 %v102_v27, %v96_v28 }
  0xab   :  { %v108_v24 = vpop.permute.xlu1 %107  ;;  %v106_v25 = vpop.permute.xlu0 %105  ;;  %v100_v47 = vadd.f32 %v99_v36, %v86_v34  ;;  %v104_v48 = vadd.f32 %v103_v37, %v90_v35 }
  0xac   :  { %v110_v33 = vsel %vm109_vm3, %v106_v25, %v108_v24 }
  0xad   :  { %v113_v43 = vmul.f32 %v112_v31, %v110_v33  ;;  %v117_v44 = vmul.f32 %v116_v32, %v110_v33 }
  0xaf   :  { %v122_v38 = vpop.permute.xlu1 %121  ;;  %v120_v39 = vpop.permute.xlu0 %119  ;;  %v114_v54 = vadd.f32 %v113_v43, %v100_v47  ;;  %v118_v55 = vadd.f32 %v117_v44, %v104_v48 }
  0xb0   :  { %v124_v42 = vsel %vm123_vm4, %v120_v39, %v122_v38 }
  0xb1   :  { %v127_v49 = vmul.f32 %v126_v40, %v124_v42  ;;  %v131_v50 = vmul.f32 %v130_v41, %v124_v42 }
  0xb3   :  { %v136_v51 = vpop.permute.xlu1 %135  ;;  %v134_v52 = vpop.permute.xlu0 %133  ;;  %v128_v60 = vadd.f32 %v127_v49, %v114_v54  ;;  %v132_v61 = vadd.f32 %v131_v50, %v118_v55 }
  0xb4   :  { %v138_v53 = vsel %vm137_vm5, %v134_v52, %v136_v51 }
  0xb5   :  { %v141_v56 = vmul.f32 %v140_v45, %v138_v53  ;;  %v145_v57 = vmul.f32 %v144_v46, %v138_v53 }
  0xb7   :  { %v150_v62 = vpop.permute.xlu1 %149  ;;  %v148_v63 = vpop.permute.xlu0 %147  ;;  %v146_v4 = vadd.f32 %v145_v57, %v132_v61  ;;  %v142_v5 = vadd.f32 %v141_v56, %v128_v60 }
  0xb8   :  { %v152_v0 = vsel %vm151_vm6, %v148_v63, %v150_v62 }
  0xb9   :  { %v155_v1 = vmul.f32 %v154_v58, %v152_v0  ;;  %v159_v2 = vmul.f32 %v158_v59, %v152_v0 }
  0xbb   :  { %v160_v3 = vadd.f32 %v159_v2, %v146_v4  ;;  %v156_v6 = vadd.f32 %v155_v1, %v142_v5 }
  0xbd   :  { %161 = vst [vmem:[#allocation9] sm:$0xff] %v160_v3  ;;  %162 = vst [vmem:[#allocation10] sm:$0xff] %v156_v6 }
  0xbe   :  { %275 = shalt.err (!%p272_p6)
}
  0xbf   :  { %s276_s15 = scalar_lea.hbm %s454_s3, 128 }
  0xc0   :  { %p277_p7 = scmp.ne.s32.totalorder %s454_s3, %s276_s15  ;;  %p280_p8 = scmp.lt.u32.totalorder %s276_s15, %s454_s3 }
  0xc2   :  { %p282_p9 = pnand %p280_p8, %p277_p7 }
  0xc4   :  { %285 = shalt.err (!%p282_p9)
}
  0xc5   :  { %172 = dma.vmem_to_hbm [thread:$0]  %s170_s0, 128, %s454_s3, [#allocation4]  }
  0xc6   :  { %s286_s21 = scalar_lea.vmem %s180_s11, 128  ;;  %p291_p11 = scmp.lt.s32.totalorder %s180_s11, %s180_s11 }
  0xc7   :  { %p287_p10 = scmp.ne.s32.totalorder %s180_s11, %s286_s21  ;;  %p292_p12 = scmp.lt.s32.totalorder %s286_s21, %s286_s21 }
  0xc9   :  { %p293_p13 = por %p292_p12, %p291_p11 }
  0xcb   :  { %p294_p0 = pnand %p293_p13, %p287_p10 }
  0xcd   :  { %297 = shalt.err (!%p294_p0)
}
  0xce   :  { %s298_s24 = scalar_lea.hbm %s455_s4, 128 }
  0xcf   :  { %p299_p1 = scmp.ne.s32.totalorder %s455_s4, %s298_s24  ;;  %p302_p2 = scmp.lt.u32.totalorder %s298_s24, %s455_s4 }
  0xd1   :  { %p304_p3 = pnand %p302_p2, %p299_p1 }
  0xd3   :  { %307 = shalt.err (!%p304_p3)
}
  0xd4   :  { %182 = dma.vmem_to_hbm [thread:$0]  %s180_s11, 128, %s455_s4, [#allocation11]  }
  0xd5   :  { %314 = dma.done.wait [#allocation4], 128  }
  0xd6   :  { %315 = vsyncadd [#allocation4], 4294967168 }
  0xd7   :  { %316 = dma.done.wait [#allocation11], 128  }
  0xd8   :  { %317 = vsyncadd [#allocation11], 4294967168 }
  0xd9   :  { %189 = vsyncpa [#allocation3], 1 }
  0xda   :  { %190 = vsyncpa [#allocation4], 1 }
  0xdb   :  { %191 = vsyncpa [#allocation11], 1 }
  0xdc   :  { %192 = vsyncpa [#allocation5], 1 }
  0xdd   :  { %193 = vsyncpa [#allocation6], 1 }

</bundles_post_ra>
